<compile_context>
chip_gen: v7x
topology: tpu7x:2x2x1
jax: 0.10.0
libtpu: 0.0.40
codegen_flags: <defaults>
</compile_context>

<pallas_src>
import functools

import jax
import jax.numpy as jnp
from jax.experimental import pallas as pl
from jax.experimental.pallas import tpu as pltpu


def _rnn_recurrence_kernel(tt, xw_ref, whh_ref, h_out_ref, h_ref):
    """Serial RNN recurrence only.

    xw_ref    : (TT, BB, H) f32  precomputed x_t @ W_ih + b_ih + b_hh (time-major)
    whh_ref   : (H, H)      bf16 recurrent weight (pre-transposed)
    h_out_ref : (TT, BB, H) f32  hidden states for this time block
    h_ref     : (BB, H)     f32  hidden-state carry (VMEM scratch, persists over grid)
    """
    t_blk = pl.program_id(1)  # time-block axis (inner, "arbitrary")

    @pl.when(t_blk == 0)
    def _():
        # Fresh h0 = 0 at the start of every batch block's time loop.
        h_ref[...] = jnp.zeros_like(h_ref)

    # Load W_hh once per block; it stays in vregs across the unrolled inner loop.
    # NOTE: for large H on v7x this block could additionally be single-buffered
    # (pipeline_mode=pl.Buffered(1)) since its index_map is constant.
    w_hh = whh_ref[...]

    def step(i, h):
        pre = xw_ref[i] + jnp.dot(
            h.astype(w_hh.dtype), w_hh, preferred_element_type=jnp.float32
        )
        h_new = jnp.tanh(pre)
        h_out_ref[i] = h_new
        return h_new

    # Unrolled so the LLO scheduler sees the whole short loop body.
    h_ref[...] = jax.lax.fori_loop(0, tt, step, h_ref[...], unroll=True)


def rnn_forward(x_bti, w_ih, w_hh, b_ih, b_hh, w_ho, b_ho, *, time_block=8):
    """x_bti: (B, T, I) batch_first input. Returns (B, T, O).

    Weights are stored pre-transposed relative to PyTorch:
      w_ih: (I, H), w_hh: (H, H), w_ho: (H, O); biases (1, H) / (1, O).
    """
    B, T, I = x_bti.shape
    H = w_hh.shape[0]
    O = w_ho.shape[1]

    tt = min(time_block, T)
    t_pad = pl.cdiv(T, tt) * tt

    # ---- Hoisted input projection (time independent), one big lane-dense matmul.
    # The batch_first -> time-major transpose is folded into the einsum output layout,
    # so no separate HBM transpose of x is materialized.
    xw_tbh = jnp.einsum(
        "bti,ih->tbh",
        x_bti.astype(jnp.float32),
        w_ih.astype(jnp.float32),
        preferred_element_type=jnp.float32,
    ) + (b_ih + b_hh).astype(jnp.float32)

    if t_pad != T:
        # Zero-pad trailing timesteps; they only affect the (discarded) final carry.
        xw_tbh = jnp.pad(xw_tbh, ((0, t_pad - T), (0, 0), (0, 0)))

    # bf16 recurrent weight for the MXU; f32 accumulation + f32 h carry in the kernel.
    w_hh_bf16 = w_hh.astype(jnp.bfloat16)

    grid = (1, t_pad // tt)  # (batch blocks, time blocks); batch axis is "parallel"

    h_tbh = pl.pallas_call(
        functools.partial(_rnn_recurrence_kernel, tt),
        out_shape=jax.ShapeDtypeStruct((t_pad, B, H), jnp.float32),
        grid_spec=pltpu.PrefetchScalarGridSpec(
            num_scalar_prefetch=0,
            grid=grid,
            in_specs=[
                pl.BlockSpec((tt, B, H), lambda b, t: (t, b, 0)),  # xw time block
                pl.BlockSpec((H, H), lambda b, t: (0, 0)),          # W_hh (constant)
            ],
            out_specs=pl.BlockSpec((tt, B, H), lambda b, t: (t, b, 0)),
            scratch_shapes=[pltpu.VMEM((B, H), jnp.float32)],        # h carry
        ),
        compiler_params=pltpu.CompilerParams(
            dimension_semantics=("parallel", "arbitrary"),
            vmem_limit_bytes=32 * 1024 * 1024,
        ),
    )(xw_tbh, w_hh_bf16)

    h_tbh = h_tbh[:T]  # drop padded timesteps

    # ---- Hoisted output projection, one lane-dense matmul; the time-major ->
    # batch_first transpose is folded into the einsum output layout.
    y_bto = jnp.einsum(
        "tbh,ho->bto",
        h_tbh,
        w_ho.astype(jnp.float32),
        preferred_element_type=jnp.float32,
    ) + b_ho.astype(jnp.float32)
    return y_bto


def rnn_reference(x_bti, w_ih, w_hh, b, w_ho, b_ho):
    """Pure-JAX f32 reference (matches torch nn.RNN(tanh) + nn.Linear)."""
    B, T, I = x_bti.shape
    H = w_hh.shape[0]

    def step(h, x_t):
        h_new = jnp.tanh(x_t @ w_ih + h @ w_hh + b)
        return h_new, h_new

    h0 = jnp.zeros((B, H), jnp.float32)
    _, hs = jax.lax.scan(step, h0, jnp.transpose(x_bti, (1, 0, 2)))
    hs = jnp.transpose(hs, (1, 0, 2))  # (B, T, H)
    return hs @ w_ho + b_ho


if __name__ == "__main__":
    # Small shapes consistent with the module's forward: (batch, seq, input_size)
    B, T, I, H, O = 2, 8, 16, 32, 8

    key = jax.random.PRNGKey(0)
    kx, k1, k2, k3, k4, k5, k6 = jax.random.split(key, 7)

    scale = 1.0 / jnp.sqrt(jnp.float32(H))  # torch nn.RNN / nn.Linear default uniform bound
    x = jax.random.normal(kx, (B, T, I), jnp.float32)
    w_ih = jax.random.uniform(k1, (I, H), jnp.float32, -scale, scale)
    w_hh = jax.random.uniform(k2, (H, H), jnp.float32, -scale, scale)
    b_ih = jax.random.uniform(k3, (1, H), jnp.float32, -scale, scale)
    b_hh = jax.random.uniform(k4, (1, H), jnp.float32, -scale, scale)
    w_ho = jax.random.uniform(k5, (H, O), jnp.float32, -scale, scale)
    b_ho = jax.random.uniform(k6, (1, O), jnp.float32, -scale, scale)

    y = rnn_forward(x, w_ih, w_hh, b_ih, b_hh, w_ho, b_ho)
    y = jax.block_until_ready(y)

    y_ref = rnn_reference(x, w_ih, w_hh, b_ih + b_hh, w_ho, b_ho)
    assert y.shape == (B, T, O)
    # bf16 recurrent weights in the kernel vs. a pure-f32 reference -> loose tolerance.
    assert jnp.allclose(y, y_ref, atol=2e-2, rtol=2e-2), "mismatch vs reference"

    print("KERNEL_OK")
</pallas_src>

<mosaic_0001>
module attributes {stable_mosaic.version = 11 : i64} {
  func.func @_rnn_recurrence_kernel(%arg0: i32, %arg1: i32, %arg2: memref<8x2x32xf32, #tpu.memory_space<vmem>>, %arg3: memref<32x32xbf16, #tpu.memory_space<vmem>>, %arg4: memref<8x2x32xf32, #tpu.memory_space<vmem>>, %arg5: memref<2x32xf32, #tpu.memory_space<vmem>>) attributes {dimension_semantics = [#tpu.dimension_semantics<parallel>, #tpu.dimension_semantics<arbitrary>], iteration_bounds = array<i64: 1, 1>, scalar_prefetch = 0 : i64, scratch_operands = 1 : i64, tpu.core_type = #tpu.core_type<tc>, window_params = [{transform_indices = @transform_0, window_bounds = array<i64: 8, 2, 32>}, {pipeline_mode = #tpu.pipeline_mode<synchronous>, transform_indices = @transform_1, window_bounds = array<i64: 32, 32>}, {transform_indices = @transform_2, window_bounds = array<i64: 8, 2, 32>}]} {
    %c0_i32 = arith.constant 0 : i32
    %0 = arith.cmpi eq, %arg1, %c0_i32 : i32
    %1 = arith.extui %0 : i1 to i32
    %c0_i32_0 = arith.constant 0 : i32
    %2 = arith.cmpi ne, %1, %c0_i32_0 : i32
    scf.if %2 {
      %cst_46 = arith.constant 0.000000e+00 : f32
      %94 = vector.broadcast %cst_46 : f32 to vector<2x32xf32>
      %c0_47 = arith.constant 0 : index
      %c0_48 = arith.constant 0 : index
      %95 = vector.load %arg5[%c0_47, %c0_48] : memref<2x32xf32, #tpu.memory_space<vmem>>, vector<2x32xf32>
      tpu.vector_store %arg5[%c0_47, %c0_48], %94 {strides = array<i32>} : memref<2x32xf32, #tpu.memory_space<vmem>>, vector<2x32xf32>,
    } else {
    }
    %c0 = arith.constant 0 : index
    %c0_1 = arith.constant 0 : index
    %3 = vector.load %arg3[%c0, %c0_1] : memref<32x32xbf16, #tpu.memory_space<vmem>>, vector<32x32xbf16>
    %c0_2 = arith.constant 0 : index
    %c0_3 = arith.constant 0 : index
    %4 = vector.load %arg5[%c0_2, %c0_3] : memref<2x32xf32, #tpu.memory_space<vmem>>, vector<2x32xf32>
    %c0_i32_4 = arith.constant 0 : i32
    %5 = arith.index_cast %c0_i32_4 : i32 to index
    %c0_5 = arith.constant 0 : index
    %c0_6 = arith.constant 0 : index
    %6 = vector.load %arg2[%5, %c0_5, %c0_6] : memref<8x2x32xf32, #tpu.memory_space<vmem>>, vector<1x2x32xf32>
    %7 = vector.shape_cast %6 : vector<1x2x32xf32> to vector<2x32xf32>
    %8 = arith.truncf %4 : vector<2x32xf32> to vector<2x32xbf16>
    %cst = arith.constant dense<0.000000e+00> : vector<2x32xf32>
    %9 = tpu.matmul %8, %3, %cst {dimension_numbers = #tpu.dot_dimension_numbers<[1], [0], [0], [1], [0, 0, 1, 1], [], []>} : vector<2x32xbf16>, vector<32x32xbf16>, vector<2x32xf32> -> vector<2x32xf32>
    %10 = arith.addf %7, %9 : vector<2x32xf32>
    %11 = math.tanh %10 : vector<2x32xf32>
    %12 = arith.index_cast %c0_i32_4 : i32 to index
    %c0_7 = arith.constant 0 : index
    %c0_8 = arith.constant 0 : index
    %13 = vector.load %arg4[%12, %c0_7, %c0_8] : memref<8x2x32xf32, #tpu.memory_space<vmem>>, vector<1x2x32xf32>
    %14 = vector.shape_cast %13 : vector<1x2x32xf32> to vector<2x32xf32>
    %15 = vector.shape_cast %11 : vector<2x32xf32> to vector<1x2x32xf32>
    tpu.vector_store %arg4[%12, %c0_7, %c0_8], %15 {strides = array<i32>} : memref<8x2x32xf32, #tpu.memory_space<vmem>>, vector<1x2x32xf32>,
    %c1_i32 = arith.constant 1 : i32
    %16 = arith.index_cast %c1_i32 : i32 to index
    %c0_9 = arith.constant 0 : index
    %c0_10 = arith.constant 0 : index
    %17 = vector.load %arg2[%16, %c0_9, %c0_10] : memref<8x2x32xf32, #tpu.memory_space<vmem>>, vector<1x2x32xf32>
    %18 = vector.shape_cast %17 : vector<1x2x32xf32> to vector<2x32xf32>
    %19 = arith.truncf %11 : vector<2x32xf32> to vector<2x32xbf16>
    %cst_11 = arith.constant dense<0.000000e+00> : vector<2x32xf32>
    %20 = tpu.matmul %19, %3, %cst_11 {dimension_numbers = #tpu.dot_dimension_numbers<[1], [0], [0], [1], [0, 0, 1, 1], [], []>} : vector<2x32xbf16>, vector<32x32xbf16>, vector<2x32xf32> -> vector<2x32xf32>
    %21 = arith.addf %18, %20 : vector<2x32xf32>
    %22 = math.tanh %21 : vector<2x32xf32>
    %23 = arith.index_cast %c1_i32 : i32 to index
    %c0_12 = arith.constant 0 : index
    %c0_13 = arith.constant 0 : index
    %24 = vector.load %arg4[%23, %c0_12, %c0_13] : memref<8x2x32xf32, #tpu.memory_space<vmem>>, vector<1x2x32xf32>
    %25 = vector.shape_cast %24 : vector<1x2x32xf32> to vector<2x32xf32>
    %26 = vector.shape_cast %22 : vector<2x32xf32> to vector<1x2x32xf32>
    tpu.vector_store %arg4[%23, %c0_12, %c0_13], %26 {strides = array<i32>} : memref<8x2x32xf32, #tpu.memory_space<vmem>>, vector<1x2x32xf32>,
    %c2_i32 = arith.constant 2 : i32
    %27 = arith.index_cast %c2_i32 : i32 to index
    %c0_14 = arith.constant 0 : index
    %c0_15 = arith.constant 0 : index
    %28 = vector.load %arg2[%27, %c0_14, %c0_15] : memref<8x2x32xf32, #tpu.memory_space<vmem>>, vector<1x2x32xf32>
    %29 = vector.shape_cast %28 : vector<1x2x32xf32> to vector<2x32xf32>
    %30 = arith.truncf %22 : vector<2x32xf32> to vector<2x32xbf16>
    %cst_16 = arith.constant dense<0.000000e+00> : vector<2x32xf32>
    %31 = tpu.matmul %30, %3, %cst_16 {dimension_numbers = #tpu.dot_dimension_numbers<[1], [0], [0], [1], [0, 0, 1, 1], [], []>} : vector<2x32xbf16>, vector<32x32xbf16>, vector<2x32xf32> -> vector<2x32xf32>
    %32 = arith.addf %29, %31 : vector<2x32xf32>
    %33 = math.tanh %32 : vector<2x32xf32>
    %34 = arith.index_cast %c2_i32 : i32 to index
    %c0_17 = arith.constant 0 : index
    %c0_18 = arith.constant 0 : index
    %35 = vector.load %arg4[%34, %c0_17, %c0_18] : memref<8x2x32xf32, #tpu.memory_space<vmem>>, vector<1x2x32xf32>
    %36 = vector.shape_cast %35 : vector<1x2x32xf32> to vector<2x32xf32>
    %37 = vector.shape_cast %33 : vector<2x32xf32> to vector<1x2x32xf32>
    tpu.vector_store %arg4[%34, %c0_17, %c0_18], %37 {strides = array<i32>} : memref<8x2x32xf32, #tpu.memory_space<vmem>>, vector<1x2x32xf32>,
    %c3_i32 = arith.constant 3 : i32
    %38 = arith.index_cast %c3_i32 : i32 to index
    %c0_19 = arith.constant 0 : index
    %c0_20 = arith.constant 0 : index
    %39 = vector.load %arg2[%38, %c0_19, %c0_20] : memref<8x2x32xf32, #tpu.memory_space<vmem>>, vector<1x2x32xf32>
    %40 = vector.shape_cast %39 : vector<1x2x32xf32> to vector<2x32xf32>
    %41 = arith.truncf %33 : vector<2x32xf32> to vector<2x32xbf16>
    %cst_21 = arith.constant dense<0.000000e+00> : vector<2x32xf32>
    %42 = tpu.matmul %41, %3, %cst_21 {dimension_numbers = #tpu.dot_dimension_numbers<[1], [0], [0], [1], [0, 0, 1, 1], [], []>} : vector<2x32xbf16>, vector<32x32xbf16>, vector<2x32xf32> -> vector<2x32xf32>
    %43 = arith.addf %40, %42 : vector<2x32xf32>
    %44 = math.tanh %43 : vector<2x32xf32>
    %45 = arith.index_cast %c3_i32 : i32 to index
    %c0_22 = arith.constant 0 : index
    %c0_23 = arith.constant 0 : index
    %46 = vector.load %arg4[%45, %c0_22, %c0_23] : memref<8x2x32xf32, #tpu.memory_space<vmem>>, vector<1x2x32xf32>
    %47 = vector.shape_cast %46 : vector<1x2x32xf32> to vector<2x32xf32>
    %48 = vector.shape_cast %44 : vector<2x32xf32> to vector<1x2x32xf32>
    tpu.vector_store %arg4[%45, %c0_22, %c0_23], %48 {strides = array<i32>} : memref<8x2x32xf32, #tpu.memory_space<vmem>>, vector<1x2x32xf32>,
    %c4_i32 = arith.constant 4 : i32
    %49 = arith.index_cast %c4_i32 : i32 to index
    %c0_24 = arith.constant 0 : index
    %c0_25 = arith.constant 0 : index
    %50 = vector.load %arg2[%49, %c0_24, %c0_25] : memref<8x2x32xf32, #tpu.memory_space<vmem>>, vector<1x2x32xf32>
    %51 = vector.shape_cast %50 : vector<1x2x32xf32> to vector<2x32xf32>
    %52 = arith.truncf %44 : vector<2x32xf32> to vector<2x32xbf16>
    %cst_26 = arith.constant dense<0.000000e+00> : vector<2x32xf32>
    %53 = tpu.matmul %52, %3, %cst_26 {dimension_numbers = #tpu.dot_dimension_numbers<[1], [0], [0], [1], [0, 0, 1, 1], [], []>} : vector<2x32xbf16>, vector<32x32xbf16>, vector<2x32xf32> -> vector<2x32xf32>
    %54 = arith.addf %51, %53 : vector<2x32xf32>
    %55 = math.tanh %54 : vector<2x32xf32>
    %56 = arith.index_cast %c4_i32 : i32 to index
    %c0_27 = arith.constant 0 : index
    %c0_28 = arith.constant 0 : index
    %57 = vector.load %arg4[%56, %c0_27, %c0_28] : memref<8x2x32xf32, #tpu.memory_space<vmem>>, vector<1x2x32xf32>
    %58 = vector.shape_cast %57 : vector<1x2x32xf32> to vector<2x32xf32>
    %59 = vector.shape_cast %55 : vector<2x32xf32> to vector<1x2x32xf32>
    tpu.vector_store %arg4[%56, %c0_27, %c0_28], %59 {strides = array<i32>} : memref<8x2x32xf32, #tpu.memory_space<vmem>>, vector<1x2x32xf32>,
    %c5_i32 = arith.constant 5 : i32
    %60 = arith.index_cast %c5_i32 : i32 to index
    %c0_29 = arith.constant 0 : index
    %c0_30 = arith.constant 0 : index
    %61 = vector.load %arg2[%60, %c0_29, %c0_30] : memref<8x2x32xf32, #tpu.memory_space<vmem>>, vector<1x2x32xf32>
    %62 = vector.shape_cast %61 : vector<1x2x32xf32> to vector<2x32xf32>
    %63 = arith.truncf %55 : vector<2x32xf32> to vector<2x32xbf16>
    %cst_31 = arith.constant dense<0.000000e+00> : vector<2x32xf32>
    %64 = tpu.matmul %63, %3, %cst_31 {dimension_numbers = #tpu.dot_dimension_numbers<[1], [0], [0], [1], [0, 0, 1, 1], [], []>} : vector<2x32xbf16>, vector<32x32xbf16>, vector<2x32xf32> -> vector<2x32xf32>
    %65 = arith.addf %62, %64 : vector<2x32xf32>
    %66 = math.tanh %65 : vector<2x32xf32>
    %67 = arith.index_cast %c5_i32 : i32 to index
    %c0_32 = arith.constant 0 : index
    %c0_33 = arith.constant 0 : index
    %68 = vector.load %arg4[%67, %c0_32, %c0_33] : memref<8x2x32xf32, #tpu.memory_space<vmem>>, vector<1x2x32xf32>
    %69 = vector.shape_cast %68 : vector<1x2x32xf32> to vector<2x32xf32>
    %70 = vector.shape_cast %66 : vector<2x32xf32> to vector<1x2x32xf32>
    tpu.vector_store %arg4[%67, %c0_32, %c0_33], %70 {strides = array<i32>} : memref<8x2x32xf32, #tpu.memory_space<vmem>>, vector<1x2x32xf32>,
    %c6_i32 = arith.constant 6 : i32
    %71 = arith.index_cast %c6_i32 : i32 to index
    %c0_34 = arith.constant 0 : index
    %c0_35 = arith.constant 0 : index
    %72 = vector.load %arg2[%71, %c0_34, %c0_35] : memref<8x2x32xf32, #tpu.memory_space<vmem>>, vector<1x2x32xf32>
    %73 = vector.shape_cast %72 : vector<1x2x32xf32> to vector<2x32xf32>
    %74 = arith.truncf %66 : vector<2x32xf32> to vector<2x32xbf16>
    %cst_36 = arith.constant dense<0.000000e+00> : vector<2x32xf32>
    %75 = tpu.matmul %74, %3, %cst_36 {dimension_numbers = #tpu.dot_dimension_numbers<[1], [0], [0], [1], [0, 0, 1, 1], [], []>} : vector<2x32xbf16>, vector<32x32xbf16>, vector<2x32xf32> -> vector<2x32xf32>
    %76 = arith.addf %73, %75 : vector<2x32xf32>
    %77 = math.tanh %76 : vector<2x32xf32>
    %78 = arith.index_cast %c6_i32 : i32 to index
    %c0_37 = arith.constant 0 : index
    %c0_38 = arith.constant 0 : index
    %79 = vector.load %arg4[%78, %c0_37, %c0_38] : memref<8x2x32xf32, #tpu.memory_space<vmem>>, vector<1x2x32xf32>
    %80 = vector.shape_cast %79 : vector<1x2x32xf32> to vector<2x32xf32>
    %81 = vector.shape_cast %77 : vector<2x32xf32> to vector<1x2x32xf32>
    tpu.vector_store %arg4[%78, %c0_37, %c0_38], %81 {strides = array<i32>} : memref<8x2x32xf32, #tpu.memory_space<vmem>>, vector<1x2x32xf32>,
    %c7_i32 = arith.constant 7 : i32
    %82 = arith.index_cast %c7_i32 : i32 to index
    %c0_39 = arith.constant 0 : index
    %c0_40 = arith.constant 0 : index
    %83 = vector.load %arg2[%82, %c0_39, %c0_40] : memref<8x2x32xf32, #tpu.memory_space<vmem>>, vector<1x2x32xf32>
    %84 = vector.shape_cast %83 : vector<1x2x32xf32> to vector<2x32xf32>
    %85 = arith.truncf %77 : vector<2x32xf32> to vector<2x32xbf16>
    %cst_41 = arith.constant dense<0.000000e+00> : vector<2x32xf32>
    %86 = tpu.matmul %85, %3, %cst_41 {dimension_numbers = #tpu.dot_dimension_numbers<[1], [0], [0], [1], [0, 0, 1, 1], [], []>} : vector<2x32xbf16>, vector<32x32xbf16>, vector<2x32xf32> -> vector<2x32xf32>
    %87 = arith.addf %84, %86 : vector<2x32xf32>
    %88 = math.tanh %87 : vector<2x32xf32>
    %89 = arith.index_cast %c7_i32 : i32 to index
    %c0_42 = arith.constant 0 : index
    %c0_43 = arith.constant 0 : index
    %90 = vector.load %arg4[%89, %c0_42, %c0_43] : memref<8x2x32xf32, #tpu.memory_space<vmem>>, vector<1x2x32xf32>
    %91 = vector.shape_cast %90 : vector<1x2x32xf32> to vector<2x32xf32>
    %92 = vector.shape_cast %88 : vector<2x32xf32> to vector<1x2x32xf32>
    tpu.vector_store %arg4[%89, %c0_42, %c0_43], %92 {strides = array<i32>} : memref<8x2x32xf32, #tpu.memory_space<vmem>>, vector<1x2x32xf32>,
    %c8_i32 = arith.constant 8 : i32
    %c0_44 = arith.constant 0 : index
    %c0_45 = arith.constant 0 : index
    %93 = vector.load %arg5[%c0_44, %c0_45] : memref<2x32xf32, #tpu.memory_space<vmem>>, vector<2x32xf32>
    tpu.vector_store %arg5[%c0_44, %c0_45], %88 {strides = array<i32>} : memref<2x32xf32, #tpu.memory_space<vmem>>, vector<2x32xf32>,
    return
  }
  func.func @transform_0(%arg0: i32, %arg1: i32) -> (i32, i32, i32) {
    %c0_i32 = arith.constant 0 : i32
    %c0_i32_0 = arith.constant 0 : i32
    return %arg1, %arg0, %c0_i32 : i32, i32, i32
  }
  func.func @transform_1(%arg0: i32, %arg1: i32) -> (i32, i32) {
    %c0_i32 = arith.constant 0 : i32
    %c0_i32_0 = arith.constant 0 : i32
    %c0_i32_1 = arith.constant 0 : i32
    return %c0_i32, %c0_i32_0 : i32, i32
  }
  func.func @transform_2(%arg0: i32, %arg1: i32) -> (i32, i32, i32) {
    %c0_i32 = arith.constant 0 : i32
    %c0_i32_0 = arith.constant 0 : i32
    return %arg1, %arg0, %c0_i32 : i32, i32, i32
  }
}

</mosaic_0001>

<bundles_post_ra>
// kernel: tpu_custom_call.1
= control target key start
LH: loop header
LB: loop body
LE: loop exit
PB: predicated region body
PF: predicated region fallthrough
CT: control target
= control target key end

     0   :  { %7 = vsyncpa [#allocation4], 0  ;;  %s817_s0 = inlined_call_operand.hbm [shape: f32[8,2,32], index: 0, kind: input, shape index: {}]   ;;  %s818_s1 = inlined_call_operand.hbm [shape: bf16[32,32], index: 1, kind: input, shape index: {}]   ;;  %s819_s2 = inlined_call_operand.hbm [shape: f32[8,2,32], index: 2, kind: output, shape index: {}]  }
   0x1   :  { %8 = vsyncpa [#allocation7], 0 }
   0x2   :  { %9 = vsyncpa [#allocation5], 0  ;;  %s680_s9 = smov [#allocation3]   ;;  %s608_s13 = scalar_lea.hbm %s817_s0, 256 }
   0x3   :  { %s15_s10 = sshll.u32 %s680_s9, 4  ;;  %p609_p0 = scmp.ne.s32.totalorder %s817_s0, %s608_s13  ;;  %s16_s10 = int_to_ptr.vmem [resolvable:$true] %s15_s10 }
   0x4   :  { %p612_p1 = scmp.lt.u32.totalorder %s608_s13, %s817_s0 }
   0x6   :  { %p614_p2 = pnand %p612_p1, %p609_p0 }
   0x8   :  { %617 = shalt.err (!%p614_p2)
}
   0x9   :  { %s618_s18 = scalar_lea.vmem %s16_s10, 256  ;;  %p623_p4 = scmp.lt.s32.totalorder %s16_s10, %s16_s10 }
   0xa   :  { %p619_p3 = scmp.ne.s32.totalorder %s16_s10, %s618_s18  ;;  %p624_p5 = scmp.lt.s32.totalorder %s618_s18, %s618_s18 }
   0xc   :  { %p625_p6 = por %p624_p5, %p623_p4 }
   0xe   :  { %p626_p7 = pnand %p625_p6, %p619_p3 }
  0x10   :  { %629 = shalt.err (!%p626_p7)
}
  0x11   :  { %s681_s19 = smov 32   ;;  %s682_s20 = smov 2  }
  0x12   :  { %21 = dma.hbm_to_vmem [thread:$0]  %s817_s0, 256, %s16_s10, [#allocation4], %s681_s19, %s681_s19, %s682_s20  }
  0x13   :  { %s683_s23 = smov [#allocation6]   ;;  %s630_s27 = scalar_lea.hbm %s818_s1, 256 }
  0x14   :  { %s27_s24 = sshll.u32 %s683_s23, 4  ;;  %p631_p8 = scmp.ne.s32.totalorder %s818_s1, %s630_s27  ;;  %s28_s24 = int_to_ptr.vmem [resolvable:$true] %s27_s24 }
  0x15   :  { %p634_p9 = scmp.lt.u32.totalorder %s630_s27, %s818_s1 }
  0x17   :  { %p636_p10 = pnand %p634_p9, %p631_p8 }
  0x19   :  { %639 = shalt.err (!%p636_p10)
}
  0x1a   :  { %s640_s4 = scalar_lea.vmem %s28_s24, 256  ;;  %p645_p12 = scmp.lt.s32.totalorder %s28_s24, %s28_s24 }
  0x1b   :  { %p641_p11 = scmp.ne.s32.totalorder %s28_s24, %s640_s4  ;;  %p646_p13 = scmp.lt.s32.totalorder %s640_s4, %s640_s4 }
  0x1d   :  { %p647_p0 = por %p646_p13, %p645_p12 }
  0x1f   :  { %p648_p1 = pnand %p647_p0, %p641_p11 }
  0x21   :  { %651 = shalt.err (!%p648_p1)
}
  0x22   :  { %s684_s0 = smov 64   ;;  %s685_s5 = smov 4  }
  0x23   :  { %33 = dma.hbm_to_vmem [thread:$0]  %s818_s1, 256, %s28_s24, [#allocation7], %s684_s0, %s684_s0, %s685_s5  }
  0x24   :  { %674 = dma.done.wait [#allocation4], 256  }
  0x25   :  { %675 = vsyncadd [#allocation4], 4294967040 }
  0x26   :  { %676 = dma.done.wait [#allocation7], 256  }
  0x27   :  { %677 = vsyncadd [#allocation7], 4294967040  ;;  %vm45_vm0 = vcmask 254976   ;;  %v686_v0 = vmov 0.0   ;;  %vm687_vm1 = vmmov 0   ;;  %v739_v1 = vld [vmem:[#allocation6] sm:$0xff]  }
  0x28   :  { %517 = vmatprep.subr.bf16.mxu0 %v686_v0  ;;  %521 = vmatprep.mubr.msk.bf16.mxu0 %vm687_vm1, %v686_v0  ;;  %46 = vst.msk [vmem:[#allocation2] sm:$0x3] %vm45_vm0, %v686_v0  ;;  %v742_v2 = vld [vmem:[#allocation6 + $0x8] sm:$0xff]   ;;  %vm66_vm2 = vcmask 261120   ;;  %v52_v5 = vld [vmem:[#allocation3] sm:$0x3] }
  0x29   :  { %525 = vmatprep.subr.bf16.mxu1 %v686_v0  ;;  %529 = vmatprep.mubr.msk.bf16.mxu1 %vm687_vm1, %v686_v0  ;;  %v115_v13 = vld [vmem:[#allocation3 + $0x2] sm:$0x3]  ;;  %v165_v21 = vld [vmem:[#allocation3 + $0x4] sm:$0x3]  ;;  %v215_v29 = vld [vmem:[#allocation3 + $0x6] sm:$0x3] }
  0x2a   :  { %518 = vmatpush3.bf16.msra.mxu0 %v739_v1  ;;  %526 = vmatpush3.bf16.msra.mxu1 %v739_v1  ;;  %v265_v37 = vld [vmem:[#allocation3 + $0x8] sm:$0x3]  ;;  %v315_v45 = vld [vmem:[#allocation3 + $0xa] sm:$0x3]  ;;  %v365_v53 = vld [vmem:[#allocation3 + $0xc] sm:$0x3] }
  0x2b   :  { %519 = vmatprep.subr.bf16.mxu0 %v686_v0  ;;  %527 = vmatprep.subr.bf16.mxu1 %v686_v0  ;;  %v415_v61 = vld [vmem:[#allocation3 + $0xe] sm:$0x3]  ;;  %s688_s1 = smov [#allocation8]  }
  0x2c   :  { %s470_s8 = sshll.u32 %s688_s1, 4  ;;  %s471_s8 = int_to_ptr.vmem [resolvable:$true] %s470_s8 }
  0x2d   :  { %s652_s9 = scalar_lea.vmem %s471_s8, 256  ;;  %p657_p3 = scmp.lt.s32.totalorder %s471_s8, %s471_s8 }
  0x2e   :  { %520 = vmatpush3.bf16.msra.mxu0 %v742_v2  ;;  %528 = vmatpush3.bf16.msra.mxu1 %v742_v2  ;;  %p653_p2 = scmp.ne.s32.totalorder %s471_s8, %s652_s9  ;;  %p658_p4 = scmp.lt.s32.totalorder %s652_s9, %s652_s9 }
  0x2f   :  { %v51_v3 = vld [vmem:[#allocation2] sm:$0x3]  ;;  %533 = vmatprep.subr.bf16.mxu0 %v686_v0  ;;  %541 = vmatprep.subr.bf16.mxu1 %v686_v0 }
  0x30   :  { %v53_v4 = vpack.c.bf16 %v51_v3, %v51_v3  ;;  %p659_p5 = por %p658_p4, %p657_p3 }
  0x32   :  { %522 = vmatmul.mubr.msk.bf16.vlgmr.msra.gmra.mrb[0].mxu0 %vm66_vm2, %v53_v4  ;;  %p660_p6 = pnand %p659_p5, %p653_p2 }
  0x33   :  { %534 = vmatpush3.bf16.msra.mxu0 %v739_v1  ;;  %537 = vmatprep.mubr.msk.bf16.mxu0 %vm687_vm1, %v686_v0 }
  0x34   :  { %535 = vmatprep.subr.bf16.mxu0 %v686_v0 }
  0x37   :  { %536 = vmatpush3.bf16.msra.mxu0 %v742_v2 }
  0x38   :  { %549 = vmatprep.subr.bf16.mxu0 %v686_v0 }
 0x105   :  { %v104_v6 = vpop.f32.mrb[0].mxu0 }
 0x106   :  { %v110_v7 = vadd.f32 %v104_v6, %v52_v5  ;;  %v523_v8 = vpop.f32.mrb[1].mxu0 }
 0x107   :  { %v107_v9 = vpop.f32.mrb[2].mxu0 }
 0x108   :  { %592 = vtanh.f32 %v110_v7  ;;  %v524_v10 = vpop.f32.mrb[3].mxu0 }
 0x112   :  { %v593_v11 = vpop.eup %592 }
 0x113   :  { %113 = vst.msk [vmem:[#allocation8] sm:$0x3] %vm45_vm0, %v593_v11  ;;  %v116_v12 = vpack.c.bf16 %v593_v11, %v593_v11 }
 0x115   :  { %530 = vmatmul.mubr.msk.bf16.vlgmr.msra.gmra.mrb[0].mxu1 %vm66_vm2, %v116_v12 }
 0x116   :  { %542 = vmatpush3.bf16.msra.mxu1 %v739_v1  ;;  %545 = vmatprep.mubr.msk.bf16.mxu1 %vm687_vm1, %v686_v0 }
 0x117   :  { %543 = vmatprep.subr.bf16.mxu1 %v686_v0 }
 0x11a   :  { %544 = vmatpush3.bf16.msra.mxu1 %v742_v2 }
 0x11b   :  { %557 = vmatprep.subr.bf16.mxu1 %v686_v0 }
 0x1e8   :  { %v154_v14 = vpop.f32.mrb[0].mxu1 }
 0x1e9   :  { %v160_v15 = vadd.f32 %v154_v14, %v115_v13  ;;  %v531_v16 = vpop.f32.mrb[1].mxu1 }
 0x1ea   :  { %v157_v17 = vpop.f32.mrb[2].mxu1 }
 0x1eb   :  { %594 = vtanh.f32 %v160_v15  ;;  %v532_v18 = vpop.f32.mrb[3].mxu1 }
 0x1f5   :  { %v595_v19 = vpop.eup %594 }
 0x1f6   :  { %163 = vst.msk [vmem:[#allocation8 + $0x2] sm:$0x3] %vm45_vm0, %v595_v19  ;;  %v166_v20 = vpack.c.bf16 %v595_v19, %v595_v19 }
 0x1f8   :  { %538 = vmatmul.mubr.msk.bf16.vlgmr.msra.gmra.mrb[4].mxu0 %vm66_vm2, %v166_v20 }
 0x1f9   :  { %550 = vmatpush3.bf16.msra.mxu0 %v739_v1  ;;  %553 = vmatprep.mubr.msk.bf16.mxu0 %vm687_vm1, %v686_v0 }
 0x1fa   :  { %551 = vmatprep.subr.bf16.mxu0 %v686_v0 }
 0x1fd   :  { %552 = vmatpush3.bf16.msra.mxu0 %v742_v2 }
 0x1fe   :  { %565 = vmatprep.subr.bf16.mxu0 %v686_v0 }
 0x2cb   :  { %v204_v22 = vpop.f32.mrb[4].mxu0 }
 0x2cc   :  { %v210_v23 = vadd.f32 %v204_v22, %v165_v21  ;;  %v539_v24 = vpop.f32.mrb[5].mxu0 }
 0x2cd   :  { %v207_v25 = vpop.f32.mrb[6].mxu0 }
 0x2ce   :  { %596 = vtanh.f32 %v210_v23  ;;  %v540_v26 = vpop.f32.mrb[7].mxu0 }
 0x2d8   :  { %v597_v27 = vpop.eup %596 }
 0x2d9   :  { %213 = vst.msk [vmem:[#allocation8 + $0x4] sm:$0x3] %vm45_vm0, %v597_v27  ;;  %v216_v28 = vpack.c.bf16 %v597_v27, %v597_v27 }
 0x2db   :  { %546 = vmatmul.mubr.msk.bf16.vlgmr.msra.gmra.mrb[4].mxu1 %vm66_vm2, %v216_v28 }
 0x2dc   :  { %558 = vmatpush3.bf16.msra.mxu1 %v739_v1  ;;  %561 = vmatprep.mubr.msk.bf16.mxu1 %vm687_vm1, %v686_v0 }
 0x2dd   :  { %559 = vmatprep.subr.bf16.mxu1 %v686_v0 }
 0x2e0   :  { %560 = vmatpush3.bf16.msra.mxu1 %v742_v2 }
 0x2e1   :  { %573 = vmatprep.subr.bf16.mxu1 %v686_v0 }
 0x3ae   :  { %v254_v30 = vpop.f32.mrb[4].mxu1 }
 0x3af   :  { %v260_v31 = vadd.f32 %v254_v30, %v215_v29  ;;  %v547_v32 = vpop.f32.mrb[5].mxu1 }
 0x3b0   :  { %v257_v33 = vpop.f32.mrb[6].mxu1 }
 0x3b1   :  { %598 = vtanh.f32 %v260_v31  ;;  %v548_v34 = vpop.f32.mrb[7].mxu1 }
 0x3bb   :  { %v599_v35 = vpop.eup %598 }
 0x3bc   :  { %263 = vst.msk [vmem:[#allocation8 + $0x6] sm:$0x3] %vm45_vm0, %v599_v35  ;;  %v266_v36 = vpack.c.bf16 %v599_v35, %v599_v35 }
 0x3be   :  { %554 = vmatmul.mubr.msk.bf16.vlgmr.msra.gmra.mrb[8].mxu0 %vm66_vm2, %v266_v36 }
 0x3bf   :  { %566 = vmatpush3.bf16.msra.mxu0 %v739_v1  ;;  %569 = vmatprep.mubr.msk.bf16.mxu0 %vm687_vm1, %v686_v0 }
 0x3c0   :  { %567 = vmatprep.subr.bf16.mxu0 %v686_v0 }
 0x3c3   :  { %568 = vmatpush3.bf16.msra.mxu0 %v742_v2 }
 0x491   :  { %v304_v38 = vpop.f32.mrb[8].mxu0 }
 0x492   :  { %v310_v39 = vadd.f32 %v304_v38, %v265_v37  ;;  %v555_v40 = vpop.f32.mrb[9].mxu0 }
 0x493   :  { %v307_v41 = vpop.f32.mrb[10].mxu0 }
 0x494   :  { %600 = vtanh.f32 %v310_v39  ;;  %v556_v42 = vpop.f32.mrb[11].mxu0 }
 0x49e   :  { %v601_v43 = vpop.eup %600 }
 0x49f   :  { %313 = vst.msk [vmem:[#allocation8 + $0x8] sm:$0x3] %vm45_vm0, %v601_v43  ;;  %v316_v44 = vpack.c.bf16 %v601_v43, %v601_v43 }
 0x4a1   :  { %562 = vmatmul.mubr.msk.bf16.vlgmr.msra.gmra.mrb[8].mxu1 %vm66_vm2, %v316_v44 }
 0x4a2   :  { %574 = vmatpush3.bf16.msra.mxu1 %v739_v1  ;;  %577 = vmatprep.mubr.msk.bf16.mxu1 %vm687_vm1, %v686_v0 }
 0x4a3   :  { %575 = vmatprep.subr.bf16.mxu1 %v686_v0 }
 0x4a6   :  { %576 = vmatpush3.bf16.msra.mxu1 %v742_v2 }
 0x574   :  { %v354_v46 = vpop.f32.mrb[8].mxu1 }
 0x575   :  { %v360_v47 = vadd.f32 %v354_v46, %v315_v45  ;;  %v563_v48 = vpop.f32.mrb[9].mxu1 }
 0x576   :  { %v357_v49 = vpop.f32.mrb[10].mxu1 }
 0x577   :  { %602 = vtanh.f32 %v360_v47  ;;  %v564_v50 = vpop.f32.mrb[11].mxu1 }
 0x581   :  { %v603_v51 = vpop.eup %602 }
 0x582   :  { %363 = vst.msk [vmem:[#allocation8 + $0xa] sm:$0x3] %vm45_vm0, %v603_v51  ;;  %v366_v52 = vpack.c.bf16 %v603_v51, %v603_v51 }
 0x584   :  { %570 = vmatmul.mubr.msk.bf16.vlgmr.msra.gmra.mrb[12].mxu0 %vm66_vm2, %v366_v52 }
 0x657   :  { %v404_v54 = vpop.f32.mrb[12].mxu0 }
 0x658   :  { %v410_v55 = vadd.f32 %v404_v54, %v365_v53  ;;  %v571_v56 = vpop.f32.mrb[13].mxu0 }
 0x659   :  { %v407_v57 = vpop.f32.mrb[14].mxu0 }
 0x65a   :  { %604 = vtanh.f32 %v410_v55  ;;  %v572_v58 = vpop.f32.mrb[15].mxu0 }
 0x664   :  { %v605_v59 = vpop.eup %604 }
 0x665   :  { %413 = vst.msk [vmem:[#allocation8 + $0xc] sm:$0x3] %vm45_vm0, %v605_v59  ;;  %v416_v60 = vpack.c.bf16 %v605_v59, %v605_v59 }
 0x667   :  { %578 = vmatmul.mubr.msk.bf16.vlgmr.msra.gmra.mrb[12].mxu1 %vm66_vm2, %v416_v60 }
 0x73a   :  { %v454_v62 = vpop.f32.mrb[12].mxu1 }
 0x73b   :  { %v460_v63 = vadd.f32 %v454_v62, %v415_v61  ;;  %v579_v0 = vpop.f32.mrb[13].mxu1 }
 0x73c   :  { %v457_v1 = vpop.f32.mrb[14].mxu1 }
 0x73d   :  { %606 = vtanh.f32 %v460_v63  ;;  %v580_v2 = vpop.f32.mrb[15].mxu1 }
 0x747   :  { %v607_v3 = vpop.eup %606 }
 0x748   :  { %464 = vst.msk [vmem:[#allocation2] sm:$0x3] %vm45_vm0, %v607_v3  ;;  %463 = vst.msk [vmem:[#allocation8 + $0xe] sm:$0x3] %vm45_vm0, %v607_v3 }
 0x749   :  { %663 = shalt.err (!%p660_p6)
}
 0x74a   :  { %s664_s12 = scalar_lea.hbm %s819_s2, 256 }
 0x74b   :  { %p665_p7 = scmp.ne.s32.totalorder %s819_s2, %s664_s12  ;;  %p668_p8 = scmp.lt.u32.totalorder %s664_s12, %s819_s2 }
 0x74d   :  { %p670_p9 = pnand %p668_p8, %p665_p7 }
 0x74f   :  { %673 = shalt.err (!%p670_p9)
}
 0x750   :  { %476 = dma.vmem_to_hbm [thread:$0]  %s471_s8, 256, %s819_s2, [#allocation5], %s681_s19, %s681_s19, %s682_s20  }
 0x751   :  { %678 = dma.done.wait [#allocation5], 256  }
 0x752   :  { %679 = vsyncadd [#allocation5], 4294967040 }
 0x753   :  { %480 = vsyncpa [#allocation4], 1 }
 0x754   :  { %481 = vsyncpa [#allocation7], 1 }
 0x755   :  { %482 = vsyncpa [#allocation5], 1 }

</bundles_post_ra>
